<compile_context>
chip_gen: v7x
topology: tpu7x:2x2x1
jax: 0.10.0
libtpu: 0.0.40
codegen_flags: <defaults>
</compile_context>

<pallas_src>
import jax
import jax.numpy as jnp
from jax.experimental import pallas as pl
from jax.experimental import pallas as _pl  # noqa: F401 (clarity alias not needed)
from jax.experimental.pallas import tpu as pltpu


# ---------------------------------------------------------------------------
# Pallas kernel: one batch tile per grid step
# ---------------------------------------------------------------------------
def bert_pooler_kernel(cls_ref, w_ref, b_ref, out_ref):
    # cls_ref: (tb, H)  CLS-token activations (native dtype, e.g. bf16)
    # w_ref  : (H, H)   Linear weight in (in, out) layout (native dtype)
    # b_ref  : (1, H)   Linear bias, f32
    # out_ref: (tb, H)  pooled output (input dtype)
    pooled = jnp.dot(cls_ref[...], w_ref[...],
                     preferred_element_type=jnp.float32)   # MXU, f32 accumulate
    pooled = pooled + b_ref[...]                            # f32 VPU (broadcast)
    out_ref[...] = jnp.tanh(pooled).astype(out_ref.dtype)   # EUP tanh, cast once


# ---------------------------------------------------------------------------
# Wrapper
# ---------------------------------------------------------------------------
@jax.jit
def bert_pooler(hidden_states, w_io, bias):
    """hidden_states: (B, S, H); w_io: (H_in, H_out) pre-transposed; bias: (H,)."""
    b, s, h = hidden_states.shape

    # Slice the [CLS] token in the wrapper: only (B, H) ever reaches the kernel.
    cls = hidden_states[:, 0, :]                      # (B, H)
    bias2d = bias.reshape(1, h).astype(jnp.float32)   # f32 epilogue operand

    tb = min(512, b)                                  # batch tile (static)
    grid = (pl.cdiv(b, tb),)

    return pl.pallas_call(
        bert_pooler_kernel,
        out_shape=jax.ShapeDtypeStruct((b, h), hidden_states.dtype),
        grid=grid,
        in_specs=[
            pl.BlockSpec((tb, h), lambda i: (i, 0)),   # CLS activations, blocked on batch
            pl.BlockSpec((h, h), lambda i: (0, 0)),    # weight: same block every step -> resident
            pl.BlockSpec((1, h), lambda i: (0, 0)),    # bias: resident
        ],
        out_specs=pl.BlockSpec((tb, h), lambda i: (i, 0)),
        compiler_params=pltpu.CompilerParams(
            dimension_semantics=("parallel",),         # megacore-shardable batch axis (v7x)
        ),
    )(cls, w_io, bias2d)


# ---------------------------------------------------------------------------
# Pure-JAX reference (mirrors the PyTorch forward, f32 math)
# ---------------------------------------------------------------------------
def bert_pooler_ref(hidden_states, weight, bias):
    first_token = hidden_states.astype(jnp.float32)[:, 0]
    w32 = weight.astype(jnp.float32)
    return jnp.tanh(first_token @ w32.T + bias.astype(jnp.float32))


# ---------------------------------------------------------------------------
if __name__ == "__main__":
    # Small but hardware-friendly shapes: B fills the 8 sublanes, H=128 is
    # lane-dense (one full vreg per row group).
    B, S, H = 8, 8, 128

    key = jax.random.PRNGKey(0)
    k_x, k_w, k_b = jax.random.split(key, 3)

    # bf16 activations/weight (MXU-native on v5e/v6e/v7x), f32 bias.
    hidden_states = jax.random.normal(k_x, (B, S, H), dtype=jnp.float32).astype(jnp.bfloat16)
    weight = (0.02 * jax.random.normal(k_w, (H, H), dtype=jnp.float32)).astype(jnp.bfloat16)
    bias = 0.02 * jax.random.normal(k_b, (H,), dtype=jnp.float32)

    # One-time parameter prep: store the weight in (in, out) layout so the
    # per-call path never pays for a transpose (torch Linear is x @ W.T + b).
    w_io = weight.T

    out = bert_pooler(hidden_states, w_io, bias)
    out = jax.block_until_ready(out)

    ref = bert_pooler_ref(hidden_states, weight, bias)

    assert out.shape == (B, H)
    err = float(jnp.max(jnp.abs(out.astype(jnp.float32) - ref)))
    # Output is bf16; tolerance covers the final bf16 rounding of the result.
    assert err < 5e-3, err

    print("KERNEL_OK")
</pallas_src>

<mosaic_0001>
module attributes {stable_mosaic.version = 11 : i64} {
  func.func @bert_pooler_kernel(%arg0: i32, %arg1: memref<8x128xbf16, #tpu.memory_space<vmem>>, %arg2: memref<128x128xbf16, #tpu.memory_space<vmem>>, %arg3: memref<1x128xf32, #tpu.memory_space<vmem>>, %arg4: memref<8x128xbf16, #tpu.memory_space<vmem>>) attributes {dimension_semantics = [#tpu.dimension_semantics<parallel>], iteration_bounds = array<i64: 1>, scalar_prefetch = 0 : i64, scratch_operands = 0 : i64, tpu.core_type = #tpu.core_type<tc>, window_params = [{transform_indices = @transform_0, window_bounds = array<i64: 8, 128>}, {pipeline_mode = #tpu.pipeline_mode<synchronous>, transform_indices = @transform_1, window_bounds = array<i64: 128, 128>}, {pipeline_mode = #tpu.pipeline_mode<synchronous>, transform_indices = @transform_2, window_bounds = array<i64: 1, 128>}, {transform_indices = @transform_3, window_bounds = array<i64: 8, 128>}]} {
    %c0 = arith.constant 0 : index
    %c0_0 = arith.constant 0 : index
    %0 = vector.load %arg1[%c0, %c0_0] : memref<8x128xbf16, #tpu.memory_space<vmem>>, vector<8x128xbf16>
    %c0_1 = arith.constant 0 : index
    %c0_2 = arith.constant 0 : index
    %1 = vector.load %arg2[%c0_1, %c0_2] : memref<128x128xbf16, #tpu.memory_space<vmem>>, vector<128x128xbf16>
    %cst = arith.constant dense<0.000000e+00> : vector<8x128xf32>
    %2 = tpu.matmul %0, %1, %cst {dimension_numbers = #tpu.dot_dimension_numbers<[1], [0], [0], [1], [0, 0, 1, 1], [], []>} : vector<8x128xbf16>, vector<128x128xbf16>, vector<8x128xf32> -> vector<8x128xf32>
    %c0_3 = arith.constant 0 : index
    %c0_4 = arith.constant 0 : index
    %3 = vector.load %arg3[%c0_3, %c0_4] : memref<1x128xf32, #tpu.memory_space<vmem>>, vector<1x128xf32>
    %4 = vector.broadcast %3 : vector<1x128xf32> to vector<8x128xf32>
    %5 = arith.addf %2, %4 : vector<8x128xf32>
    %6 = math.tanh %5 : vector<8x128xf32>
    %7 = arith.truncf %6 : vector<8x128xf32> to vector<8x128xbf16>
    %c0_5 = arith.constant 0 : index
    %c0_6 = arith.constant 0 : index
    %8 = vector.load %arg4[%c0_5, %c0_6] : memref<8x128xbf16, #tpu.memory_space<vmem>>, vector<8x128xbf16>
    tpu.vector_store %arg4[%c0_5, %c0_6], %7 {strides = array<i32>} : memref<8x128xbf16, #tpu.memory_space<vmem>>, vector<8x128xbf16>,
    return
  }
  func.func @transform_0(%arg0: i32) -> (i32, i32) {
    %c0_i32 = arith.constant 0 : i32
    %c0_i32_0 = arith.constant 0 : i32
    return %arg0, %c0_i32 : i32, i32
  }
  func.func @transform_1(%arg0: i32) -> (i32, i32) {
    %c0_i32 = arith.constant 0 : i32
    %c0_i32_0 = arith.constant 0 : i32
    %c0_i32_1 = arith.constant 0 : i32
    return %c0_i32, %c0_i32_0 : i32, i32
  }
  func.func @transform_2(%arg0: i32) -> (i32, i32) {
    %c0_i32 = arith.constant 0 : i32
    %c0_i32_0 = arith.constant 0 : i32
    %c0_i32_1 = arith.constant 0 : i32
    return %c0_i32, %c0_i32_0 : i32, i32
  }
  func.func @transform_3(%arg0: i32) -> (i32, i32) {
    %c0_i32 = arith.constant 0 : i32
    %c0_i32_0 = arith.constant 0 : i32
    return %arg0, %c0_i32 : i32, i32
  }
}

</mosaic_0001>

<bundles_post_ra>
// kernel: bert_pooler.1
= control target key start
LH: loop header
LB: loop body
LE: loop exit
PB: predicated region body
PF: predicated region fallthrough
CT: control target
= control target key end

     0   :  { %8 = vsyncpa [#allocation3], 0  ;;  %s318_s0 = inlined_call_operand.vmem [shape: bf16[8,128], index: 0, kind: input, shape index: {}]   ;;  %s319_s1 = inlined_call_operand.hbm [shape: bf16[128,128], index: 1, kind: input, shape index: {}]   ;;  %s320_s2 = inlined_call_operand.vmem [shape: f32[1,128], index: 2, kind: input, shape index: {}]   ;;  %s321_s3 = inlined_call_operand.hbm [shape: bf16[8,128], index: 3, kind: output, shape index: {}]  }
   0x1   :  { %9 = vsyncpa [#allocation4], 0  ;;  %s262_s12 = smov [#allocation2]   ;;  %s214_s16 = scalar_lea.hbm %s319_s1, 1024 }
   0x2   :  { %s17_s13 = sshll.u32 %s262_s12, 4  ;;  %p215_p0 = scmp.ne.s32.totalorder %s319_s1, %s214_s16  ;;  %s18_s13 = int_to_ptr.vmem [resolvable:$true] %s17_s13 }
   0x3   :  { %p218_p1 = scmp.lt.u32.totalorder %s214_s16, %s319_s1 }
   0x5   :  { %p220_p2 = pnand %p218_p1, %p215_p0 }
   0x7   :  { %223 = shalt.err (!%p220_p2)
}
   0x8   :  { %s224_s21 = scalar_lea.vmem %s18_s13, 1024  ;;  %p229_p4 = scmp.lt.s32.totalorder %s18_s13, %s18_s13 }
   0x9   :  { %p225_p3 = scmp.ne.s32.totalorder %s18_s13, %s224_s21  ;;  %p230_p5 = scmp.lt.s32.totalorder %s224_s21, %s224_s21 }
   0xb   :  { %p231_p6 = por %p230_p5, %p229_p4 }
   0xd   :  { %p232_p7 = pnand %p231_p6, %p225_p3 }
   0xf   :  { %235 = shalt.err (!%p232_p7)
}
  0x10   :  { %s263_s22 = smov 64   ;;  %s264_s23 = smov 4  }
  0x11   :  { %23 = dma.hbm_to_vmem [thread:$0]  %s319_s1, 1024, %s18_s13, [#allocation3], %s263_s22, %s263_s22, %s264_s23  }
  0x12   :  { %258 = dma.done.wait [#allocation3], 1024  }
  0x13   :  { %259 = vsyncadd [#allocation3], 4294966272  ;;  %v265_v0 = vmov 0.0   ;;  %vm266_vm0 = vmmov 0   ;;  %v204_v1 = vld [vmem:[#allocation2] sm:$0xff]   ;;  %v205_v2 = vld [vmem:[#allocation2 + $0x8] sm:$0xff]  }
  0x14   :  { %178 = vmatprep.subr.bf16.mxu0 %v265_v0  ;;  %194 = vmatprep.mubr.msk.bf16.mxu0 %vm266_vm0, %v265_v0  ;;  %v206_v3 = vld [vmem:[#allocation2 + $0x10] sm:$0xff]   ;;  %v207_v4 = vld [vmem:[#allocation2 + $0x18] sm:$0xff]   ;;  %v208_v5 = vld [vmem:[#allocation2 + $0x20] sm:$0xff]   ;;  %s267_s29 = smov [#allocation5]  }
  0x15   :  { %179 = vmatpush3.bf16.msra.mxu0 %v204_v1  ;;  %v209_v6 = vld [vmem:[#allocation2 + $0x28] sm:$0xff]   ;;  %v210_v7 = vld [vmem:[#allocation2 + $0x30] sm:$0xff]   ;;  %v211_v8 = vld [vmem:[#allocation2 + $0x38] sm:$0xff]   ;;  %s151_s30 = sshll.u32 %s267_s29, 4  ;;  %s152_s30 = int_to_ptr.vmem [resolvable:$true] %s151_s30 }
  0x16   :  { %180 = vmatprep.subr.bf16.mxu0 %v265_v0  ;;  %v30_v9 = vld [vmem:[%s318_s0] sm:$0xf]  ;;  %s236_s4 = scalar_lea.vmem %s152_s30, 64  ;;  %p241_p9 = scmp.lt.s32.totalorder %s152_s30, %s152_s30 }
  0x17   :  { %v160_v10 = vld [vmem:[%s320_s2] ss:$0 sm:$0xff]  ;;  %p237_p8 = scmp.ne.s32.totalorder %s152_s30, %s236_s4  ;;  %p242_p10 = scmp.lt.s32.totalorder %s236_s4, %s236_s4 }
  0x19   :  { %181 = vmatpush3.bf16.msra.mxu0 %v205_v2  ;;  %p243_p11 = por %p242_p10, %p241_p9 }
  0x1a   :  { %182 = vmatprep.subr.bf16.mxu0 %v265_v0 }
  0x1b   :  { %p244_p12 = pnand %p243_p11, %p237_p8 }
  0x1d   :  { %183 = vmatpush3.bf16.msra.mxu0 %v206_v3 }
  0x1e   :  { %184 = vmatprep.subr.bf16.mxu0 %v265_v0 }
  0x21   :  { %185 = vmatpush3.bf16.msra.mxu0 %v207_v4 }
  0x22   :  { %186 = vmatprep.subr.bf16.mxu0 %v265_v0 }
  0x25   :  { %187 = vmatpush3.bf16.msra.mxu0 %v208_v5 }
  0x26   :  { %188 = vmatprep.subr.bf16.mxu0 %v265_v0 }
  0x29   :  { %189 = vmatpush3.bf16.msra.mxu0 %v209_v6 }
  0x2a   :  { %190 = vmatprep.subr.bf16.mxu0 %v265_v0 }
  0x2d   :  { %191 = vmatpush3.bf16.msra.mxu0 %v210_v7 }
  0x2e   :  { %192 = vmatprep.subr.bf16.mxu0 %v265_v0 }
  0x31   :  { %193 = vmatpush3.bf16.msra.mxu0 %v211_v8 }
  0x34   :  { %195 = vmatmul.mubr.bf16.vlgmr.msra.gmra.mrb[0].mxu0 %v30_v9 }
 0x107   :  { %v136_v11 = vpop.f32.mrb[0].mxu0 }
 0x108   :  { %v137_v12 = vadd.f32 %v160_v10, %v136_v11  ;;  %v196_v13 = vpop.f32.mrb[1].mxu0 }
 0x109   :  { %v139_v14 = vpop.f32.mrb[2].mxu0 }
 0x10a   :  { %212 = vtanh.f32 %v137_v12  ;;  %v197_v15 = vpop.f32.mrb[3].mxu0 }
 0x114   :  { %v213_v16 = vpop.eup %212 }
 0x115   :  { %v143_v17 = vpack.c.bf16 %v213_v16, %v213_v16 }
 0x117   :  { %144 = vst [vmem:[#allocation5] sm:$0xf] %v143_v17 }
 0x118   :  { %247 = shalt.err (!%p244_p12)
}
 0x119   :  { %s248_s5 = scalar_lea.hbm %s321_s3, 64 }
 0x11a   :  { %p249_p13 = scmp.ne.s32.totalorder %s321_s3, %s248_s5  ;;  %p252_p0 = scmp.lt.u32.totalorder %s248_s5, %s321_s3 }
 0x11c   :  { %p254_p1 = pnand %p252_p0, %p249_p13 }
 0x11e   :  { %257 = shalt.err (!%p254_p1)
}
 0x11f   :  { %154 = dma.vmem_to_hbm [thread:$0]  %s152_s30, 64, %s321_s3, [#allocation4]  }
 0x120   :  { %260 = dma.done.wait [#allocation4], 64  }
 0x121   :  { %261 = vsyncadd [#allocation4], 4294967232 }
 0x122   :  { %158 = vsyncpa [#allocation3], 1 }
 0x123   :  { %159 = vsyncpa [#allocation4], 1 }

</bundles_post_ra>
